<compile_context>
chip_gen: v5e
topology: v5e:2x2
jax: 0.10.0
libtpu: 0.0.40
codegen_flags: <defaults>
</compile_context>

<pallas_src>
import functools

import jax
import jax.numpy as jnp
from jax import lax
from jax.experimental import pallas as pl
from jax.experimental.pallas import tpu as pltpu

_NEG_BIG = -1e30  # finite "minus infinity": no exp(-inf - -inf) = NaN edge cases


def _round_up(x, m):
    return ((x + m - 1) // m) * m


# --------------------------------------------------------------------------- #
# Kernel 1: fused K/Q/V projection  kqv = x @ W_kqv  (bf16 MXU, f32 accumulate)
# --------------------------------------------------------------------------- #
def _qkv_proj_kernel(x_ref, w_ref, k_ref, q_ref, v_ref):
    # x_ref: (bt_proj, C) f32 (lane dim == full C -> no padded HBM reads)
    # w_ref: (C, 3*c_pad) bf16, Q columns pre-scaled by 1/sqrt(head_size)
    x_bf = x_ref[...].astype(jnp.bfloat16)
    kqv = jnp.dot(x_bf, w_ref[...], preferred_element_type=jnp.float32)
    c = k_ref.shape[-1]                       # c_pad (multiple of 128 -> aligned slices)
    k_ref[...] = kqv[:, 0 * c:1 * c].astype(k_ref.dtype)
    q_ref[...] = kqv[:, 1 * c:2 * c].astype(q_ref.dtype)
    v_ref[...] = kqv[:, 2 * c:3 * c].astype(v_ref.dtype)


# --------------------------------------------------------------------------- #
# Kernel 2: flash attention, triangular schedule via scalar-prefetched tables
# --------------------------------------------------------------------------- #
def _flash_attn_kernel(qi_tbl, ki_tbl, q_ref, k_ref, v_ref, bias_ref, o_ref,
                       m_sc, l_sc, acc_sc):
    s_idx = pl.program_id(1)
    qi = qi_tbl[s_idx]
    ki = ki_tbl[s_idx]

    @pl.when(ki == 0)          # first kv step of this q tile
    def _init():
        m_sc[...] = jnp.full_like(m_sc, _NEG_BIG)
        l_sc[...] = jnp.zeros_like(l_sc)
        acc_sc[...] = jnp.zeros_like(acc_sc)

    # scores = Q @ K^T (scale already folded into Q): bf16 operands, f32 acc,
    # contract last axes directly -> no materialized transpose.
    s = lax.dot_general(
        q_ref[...], k_ref[...],
        dimension_numbers=(((1,), (1,)), ((), ())),
        preferred_element_type=jnp.float32)

    def _update(scores):
        m_prev = m_sc[...]
        m_new = jnp.maximum(m_prev, jnp.max(scores, axis=-1, keepdims=True))
        alpha = jnp.exp(m_prev - m_new)
        p = jnp.exp(scores - m_new)
        l_sc[...] = alpha * l_sc[...] + jnp.sum(p, axis=-1, keepdims=True)
        acc_sc[...] = alpha * acc_sc[...] + jnp.dot(
            p.astype(v_ref.dtype), v_ref[...], preferred_element_type=jnp.float32)
        m_sc[...] = m_new

    @pl.when(ki < qi)          # interior block: fully unmasked, no mask work at all
    def _():
        _update(s)

    @pl.when(ki == qi)         # diagonal block: add the hoisted causal bias
    def _():                   # (also masks zero-padded key rows of the last tile)
        _update(s + bias_ref[...])

    @pl.when(ki == qi)         # diagonal is the last contributing kv step
    def _finalize():
        o_ref[...] = (acc_sc[...] / l_sc[...]).astype(o_ref.dtype)   # exact divide


# --------------------------------------------------------------------------- #
# Wrapper
# --------------------------------------------------------------------------- #
@functools.partial(jax.jit, static_argnames=("block_t",))
def attention_head(x, wk, wq, wv, *, block_t=512):
    """Single-head causal self-attention, matching the PyTorch AttentionHead.

    x          : (B, T, C) float32
    wk, wq, wv : (C, C) float32 nn.Linear weights (out_features, in_features);
                 forward computes x @ W.T (no bias).
    """
    B, T, C = x.shape
    head_size = C
    scale = 1.0 / float(head_size) ** 0.5

    c_pad = _round_up(C, 128)
    # bf16 k/q/v tiles -> sublane tile is 16, so bt must be a multiple of 16.
    bt = _round_up(min(block_t, _round_up(T, 16)), 16)
    t_pad = _round_up(T, bt)
    nq = t_pad // bt
    rows = B * t_pad

    # ---------------- fused QKV projection ----------------
    # x stays un-padded in the lane dim (block last dim == C == full array dim).
    x_pad = jnp.zeros((B, t_pad, C), jnp.float32).at[:, :T, :].set(x)
    x_flat = x_pad.reshape(rows, C)

    # Fused, pre-transposed, zero-padded weight: columns [K | Q | V], each c_pad wide.
    # The softmax scale is folded into the Q columns (free at trace time).
    w_kqv = jnp.zeros((C, 3 * c_pad), jnp.float32)
    w_kqv = w_kqv.at[:, 0 * c_pad:0 * c_pad + C].set(wk.T)
    w_kqv = w_kqv.at[:, 1 * c_pad:1 * c_pad + C].set(wq.T * scale)
    w_kqv = w_kqv.at[:, 2 * c_pad:2 * c_pad + C].set(wv.T)
    w_kqv = w_kqv.astype(jnp.bfloat16)

    # Projection row-tile: grow (up to 1024 rows) so tiny problems collapse to a
    # single grid step and the weight is loaded once.
    bt_proj = bt
    while bt_proj * 2 <= min(rows, 1024) and rows % (bt_proj * 2) == 0:
        bt_proj *= 2

    k, q, v = pl.pallas_call(
        _qkv_proj_kernel,
        out_shape=tuple(
            jax.ShapeDtypeStruct((rows, c_pad), jnp.bfloat16) for _ in range(3)),
        grid_spec=pltpu.PrefetchScalarGridSpec(
            num_scalar_prefetch=0,
            grid=(rows // bt_proj,),
            in_specs=[
                pl.BlockSpec((bt_proj, C), lambda r: (r, 0)),
                pl.BlockSpec((C, 3 * c_pad), lambda r: (0, 0)),
            ],
            out_specs=(
                pl.BlockSpec((bt_proj, c_pad), lambda r: (r, 0)),
                pl.BlockSpec((bt_proj, c_pad), lambda r: (r, 0)),
                pl.BlockSpec((bt_proj, c_pad), lambda r: (r, 0)),
            ),
        ),
        compiler_params=pltpu.CompilerParams(dimension_semantics=("parallel",)),
    )(x_flat, w_kqv)

    # ---------------- flash attention (triangular schedule) ----------------
    # Enumerate only the causal lower-triangle (qi, ki<=qi) steps; the tables are
    # scalar-prefetched into SMEM and drive both the index_maps and the kernel.
    qi_list, ki_list = [], []
    for q_i in range(nq):
        for k_i in range(q_i + 1):
            qi_list.append(q_i)
            ki_list.append(k_i)
    tri = len(qi_list)                       # nq*(nq+1)//2
    qi_tbl = jnp.asarray(qi_list, dtype=jnp.int32)
    ki_tbl = jnp.asarray(ki_list, dtype=jnp.int32)

    # Hoisted causal bias for diagonal blocks (resident in VMEM via constant map).
    bias = jnp.where(jnp.tril(jnp.ones((bt, bt), dtype=bool)),
                     0.0, _NEG_BIG).astype(jnp.float32)

    # Row-block index of (batch b, tile t) in the flattened (rows, c_pad) arrays.
    q_spec = pl.BlockSpec((bt, c_pad), lambda b, s, qt, kt: (b * nq + qt[s], 0))
    kv_spec = pl.BlockSpec((bt, c_pad), lambda b, s, qt, kt: (b * nq + kt[s], 0))
    bias_spec = pl.BlockSpec((bt, bt), lambda b, s, qt, kt: (0, 0))
    o_spec = pl.BlockSpec((bt, c_pad), lambda b, s, qt, kt: (b * nq + qt[s], 0))

    out_flat = pl.pallas_call(
        _flash_attn_kernel,
        out_shape=jax.ShapeDtypeStruct((rows, c_pad), jnp.float32),
        grid_spec=pltpu.PrefetchScalarGridSpec(
            num_scalar_prefetch=2,
            grid=(B, tri),
            in_specs=[q_spec, kv_spec, kv_spec, bias_spec],
            out_specs=o_spec,
            scratch_shapes=[
                pltpu.VMEM((bt, 1), jnp.float32),      # running max  m
                pltpu.VMEM((bt, 1), jnp.float32),      # running sum  l
                pltpu.VMEM((bt, c_pad), jnp.float32),  # f32 accumulator
            ],
        ),
        compiler_params=pltpu.CompilerParams(
            dimension_semantics=("parallel", "arbitrary")),
    )(qi_tbl, ki_tbl, q, k, v, bias)

    return out_flat.reshape(B, t_pad, c_pad)[:, :T, :C]


# --------------------------------------------------------------------------- #
# Plain-JAX reference (matches the PyTorch module semantics, full f32)
# --------------------------------------------------------------------------- #
def reference_attention_head(x, wk, wq, wv):
    B, T, C = x.shape
    K = x @ wk.T
    Q = x @ wq.T
    V = x @ wv.T
    dot = (Q @ jnp.swapaxes(K, -1, -2)) / (float(C) ** 0.5)
    mask = jnp.tril(jnp.ones((T, T), dtype=bool))[None, :, :]
    dot = jnp.where(mask, dot, -jnp.inf)
    w = jax.nn.softmax(dot, axis=-1)
    return w @ V


if __name__ == "__main__":
    key = jax.random.PRNGKey(0)
    kx, kk, kq, kv_key, kx2 = jax.random.split(key, 5)

    B, T, C = 2, 8, 32  # batch, seq, n_embd (module-consistent small shapes)
    x = jax.random.normal(kx, (B, T, C), dtype=jnp.float32)
    # nn.Linear(C, C, bias=False) weights, (out_features, in_features) layout.
    wk = jax.random.normal(kk, (C, C), dtype=jnp.float32) * (1.0 / C ** 0.5)
    wq = jax.random.normal(kq, (C, C), dtype=jnp.float32) * (1.0 / C ** 0.5)
    wv = jax.random.normal(kv_key, (C, C), dtype=jnp.float32) * (1.0 / C ** 0.5)

    # Tolerance reflects bf16 MXU operands (f32 accumulation) vs an all-f32 reference.
    out = jax.block_until_ready(attention_head(x, wk, wq, wv))
    ref = reference_attention_head(x, wk, wq, wv)
    assert out.shape == (B, T, C)
    assert jnp.allclose(out, ref, atol=7e-2, rtol=7e-2), "mismatch vs reference (small)"

    # Exercise the tiled path: multiple q/kv tiles, triangular schedule, interior
    # (unmasked) blocks, diagonal mask, and sequence padding (T not multiple of bt).
    T2 = 200
    x2 = jax.random.normal(kx2, (B, T2, C), dtype=jnp.float32)
    out2 = jax.block_until_ready(attention_head(x2, wk, wq, wv, block_t=128))
    ref2 = reference_attention_head(x2, wk, wq, wv)
    assert out2.shape == (B, T2, C)
    assert jnp.allclose(out2, ref2, atol=7e-2, rtol=7e-2), "mismatch vs reference (tiled)"

    print("KERNEL_OK")
</pallas_src>

<mosaic_0001>
module attributes {stable_mosaic.version = 11 : i64} {
  func.func @_qkv_proj_kernel(%arg0: i32, %arg1: memref<32x32xf32, #tpu.memory_space<vmem>>, %arg2: memref<32x384xbf16, #tpu.memory_space<vmem>>, %arg3: memref<32x128xbf16, #tpu.memory_space<vmem>>, %arg4: memref<32x128xbf16, #tpu.memory_space<vmem>>, %arg5: memref<32x128xbf16, #tpu.memory_space<vmem>>) attributes {dimension_semantics = [#tpu.dimension_semantics<parallel>], iteration_bounds = array<i64: 1>, scalar_prefetch = 0 : i64, scratch_operands = 0 : i64, tpu.core_type = #tpu.core_type<tc>, window_params = [{transform_indices = @transform_0, window_bounds = array<i64: 32, 32>}, {pipeline_mode = #tpu.pipeline_mode<synchronous>, transform_indices = @transform_1, window_bounds = array<i64: 32, 384>}, {transform_indices = @transform_2, window_bounds = array<i64: 32, 128>}, {transform_indices = @transform_3, window_bounds = array<i64: 32, 128>}, {transform_indices = @transform_4, window_bounds = array<i64: 32, 128>}]} {
    %c0 = arith.constant 0 : index
    %c0_0 = arith.constant 0 : index
    %0 = vector.load %arg1[%c0, %c0_0] : memref<32x32xf32, #tpu.memory_space<vmem>>, vector<32x32xf32>
    %1 = arith.truncf %0 : vector<32x32xf32> to vector<32x32xbf16>
    %c0_1 = arith.constant 0 : index
    %c0_2 = arith.constant 0 : index
    %2 = vector.load %arg2[%c0_1, %c0_2] : memref<32x384xbf16, #tpu.memory_space<vmem>>, vector<32x384xbf16>
    %cst = arith.constant dense<0.000000e+00> : vector<32x384xf32>
    %3 = tpu.matmul %1, %2, %cst {dimension_numbers = #tpu.dot_dimension_numbers<[1], [0], [0], [1], [0, 0, 1, 1], [], []>} : vector<32x32xbf16>, vector<32x384xbf16>, vector<32x384xf32> -> vector<32x384xf32>
    %4 = vector.extract_strided_slice %3 {offsets = [0, 0], sizes = [32, 128], strides = [1, 1]} : vector<32x384xf32> to vector<32x128xf32>
    %5 = arith.truncf %4 : vector<32x128xf32> to vector<32x128xbf16>
    %c0_3 = arith.constant 0 : index
    %c0_4 = arith.constant 0 : index
    %6 = vector.load %arg3[%c0_3, %c0_4] : memref<32x128xbf16, #tpu.memory_space<vmem>>, vector<32x128xbf16>
    tpu.vector_store %arg3[%c0_3, %c0_4], %5 {strides = array<i32>} : memref<32x128xbf16, #tpu.memory_space<vmem>>, vector<32x128xbf16>,
    %7 = vector.extract_strided_slice %3 {offsets = [0, 128], sizes = [32, 128], strides = [1, 1]} : vector<32x384xf32> to vector<32x128xf32>
    %8 = arith.truncf %7 : vector<32x128xf32> to vector<32x128xbf16>
    %c0_5 = arith.constant 0 : index
    %c0_6 = arith.constant 0 : index
    %9 = vector.load %arg4[%c0_5, %c0_6] : memref<32x128xbf16, #tpu.memory_space<vmem>>, vector<32x128xbf16>
    tpu.vector_store %arg4[%c0_5, %c0_6], %8 {strides = array<i32>} : memref<32x128xbf16, #tpu.memory_space<vmem>>, vector<32x128xbf16>,
    %10 = vector.extract_strided_slice %3 {offsets = [0, 256], sizes = [32, 128], strides = [1, 1]} : vector<32x384xf32> to vector<32x128xf32>
    %11 = arith.truncf %10 : vector<32x128xf32> to vector<32x128xbf16>
    %c0_7 = arith.constant 0 : index
    %c0_8 = arith.constant 0 : index
    %12 = vector.load %arg5[%c0_7, %c0_8] : memref<32x128xbf16, #tpu.memory_space<vmem>>, vector<32x128xbf16>
    tpu.vector_store %arg5[%c0_7, %c0_8], %11 {strides = array<i32>} : memref<32x128xbf16, #tpu.memory_space<vmem>>, vector<32x128xbf16>,
    return
  }
  func.func @transform_0(%arg0: i32) -> (i32, i32) {
    %c0_i32 = arith.constant 0 : i32
    %c0_i32_0 = arith.constant 0 : i32
    return %arg0, %c0_i32 : i32, i32
  }
  func.func @transform_1(%arg0: i32) -> (i32, i32) {
    %c0_i32 = arith.constant 0 : i32
    %c0_i32_0 = arith.constant 0 : i32
    %c0_i32_1 = arith.constant 0 : i32
    return %c0_i32, %c0_i32_0 : i32, i32
  }
  func.func @transform_2(%arg0: i32) -> (i32, i32) {
    %c0_i32 = arith.constant 0 : i32
    %c0_i32_0 = arith.constant 0 : i32
    return %arg0, %c0_i32 : i32, i32
  }
  func.func @transform_3(%arg0: i32) -> (i32, i32) {
    %c0_i32 = arith.constant 0 : i32
    %c0_i32_0 = arith.constant 0 : i32
    return %arg0, %c0_i32 : i32, i32
  }
  func.func @transform_4(%arg0: i32) -> (i32, i32) {
    %c0_i32 = arith.constant 0 : i32
    %c0_i32_0 = arith.constant 0 : i32
    return %arg0, %c0_i32 : i32, i32
  }
}

module attributes {stable_mosaic.version = 11 : i64} {
  func.func @_flash_attn_kernel(%arg0: i32, %arg1: i32, %arg2: memref<1xi32, #tpu.memory_space<smem>>, %arg3: memref<1xi32, #tpu.memory_space<smem>>, %arg4: memref<16x128xbf16, #tpu.memory_space<vmem>>, %arg5: memref<16x128xbf16, #tpu.memory_space<vmem>>, %arg6: memref<16x128xbf16, #tpu.memory_space<vmem>>, %arg7: memref<16x16xf32, #tpu.memory_space<vmem>>, %arg8: memref<16x128xf32, #tpu.memory_space<vmem>>, %arg9: memref<16x1xf32, #tpu.memory_space<vmem>>, %arg10: memref<16x1xf32, #tpu.memory_space<vmem>>, %arg11: memref<16x128xf32, #tpu.memory_space<vmem>>) attributes {dimension_semantics = [#tpu.dimension_semantics<parallel>, #tpu.dimension_semantics<arbitrary>], iteration_bounds = array<i64: 2, 1>, scalar_prefetch = 2 : i64, scratch_operands = 3 : i64, tpu.core_type = #tpu.core_type<tc>, window_params = [{transform_indices = @transform_0, window_bounds = array<i64: 16, 128>}, {transform_indices = @transform_1, window_bounds = array<i64: 16, 128>}, {transform_indices = @transform_2, window_bounds = array<i64: 16, 128>}, {pipeline_mode = #tpu.pipeline_mode<synchronous>, transform_indices = @transform_3, window_bounds = array<i64: 16, 16>}, {transform_indices = @transform_4, window_bounds = array<i64: 16, 128>}]} {
    %0 = arith.index_cast %arg1 : i32 to index
    %1 = memref.load %arg2[%0] : memref<1xi32, #tpu.memory_space<smem>>
    %2 = arith.index_cast %arg1 : i32 to index
    %3 = memref.load %arg3[%2] : memref<1xi32, #tpu.memory_space<smem>>
    %c0_i32 = arith.constant 0 : i32
    %4 = arith.cmpi eq, %3, %c0_i32 : i32
    %5 = arith.extui %4 : i1 to i32
    %c0_i32_0 = arith.constant 0 : i32
    %6 = arith.cmpi ne, %5, %c0_i32_0 : i32
    scf.if %6 {
      %cst_7 = arith.constant -1.000000e+30 : f32
      %19 = vector.broadcast %cst_7 : f32 to vector<16x1xf32>
      %c0_8 = arith.constant 0 : index
      %c0_9 = arith.constant 0 : index
      %20 = vector.load %arg9[%c0_8, %c0_9] : memref<16x1xf32, #tpu.memory_space<vmem>>, vector<16x1xf32>
      tpu.vector_store %arg9[%c0_8, %c0_9], %19 {strides = array<i32>} : memref<16x1xf32, #tpu.memory_space<vmem>>, vector<16x1xf32>,
      %cst_10 = arith.constant 0.000000e+00 : f32
      %21 = vector.broadcast %cst_10 : f32 to vector<16x1xf32>
      %c0_11 = arith.constant 0 : index
      %c0_12 = arith.constant 0 : index
      %22 = vector.load %arg10[%c0_11, %c0_12] : memref<16x1xf32, #tpu.memory_space<vmem>>, vector<16x1xf32>
      tpu.vector_store %arg10[%c0_11, %c0_12], %21 {strides = array<i32>} : memref<16x1xf32, #tpu.memory_space<vmem>>, vector<16x1xf32>,
      %cst_13 = arith.constant 0.000000e+00 : f32
      %23 = vector.broadcast %cst_13 : f32 to vector<16x128xf32>
      %c0_14 = arith.constant 0 : index
      %c0_15 = arith.constant 0 : index
      %24 = vector.load %arg11[%c0_14, %c0_15] : memref<16x128xf32, #tpu.memory_space<vmem>>, vector<16x128xf32>
      tpu.vector_store %arg11[%c0_14, %c0_15], %23 {strides = array<i32>} : memref<16x128xf32, #tpu.memory_space<vmem>>, vector<16x128xf32>,
    } else {
    }
    %c0 = arith.constant 0 : index
    %c0_1 = arith.constant 0 : index
    %7 = vector.load %arg4[%c0, %c0_1] : memref<16x128xbf16, #tpu.memory_space<vmem>>, vector<16x128xbf16>
    %c0_2 = arith.constant 0 : index
    %c0_3 = arith.constant 0 : index
    %8 = vector.load %arg5[%c0_2, %c0_3] : memref<16x128xbf16, #tpu.memory_space<vmem>>, vector<16x128xbf16>
    %cst = arith.constant dense<0.000000e+00> : vector<16x16xf32>
    %9 = tpu.matmul %7, %8, %cst {dimension_numbers = #tpu.dot_dimension_numbers<[1], [1], [0], [0], [0, 0, 1, 0], [], []>} : vector<16x128xbf16>, vector<16x128xbf16>, vector<16x16xf32> -> vector<16x16xf32>
    %10 = arith.cmpi slt, %3, %1 : i32
    %11 = arith.extui %10 : i1 to i32
    %c0_i32_4 = arith.constant 0 : i32
    %12 = arith.cmpi ne, %11, %c0_i32_4 : i32
    scf.if %12 {
      %c0_7 = arith.constant 0 : index
      %c0_8 = arith.constant 0 : index
      %19 = vector.load %arg9[%c0_7, %c0_8] : memref<16x1xf32, #tpu.memory_space<vmem>>, vector<16x1xf32>
      %cst_9 = arith.constant dense<0xFF800000> : vector<16xf32>
      %20 = vector.multi_reduction <maximumf>, %9, %cst_9 [1] : vector<16x16xf32> to vector<16xf32>
      %21 = vector.shape_cast %20 : vector<16xf32> to vector<16x1xf32>
      %22 = arith.maximumf %19, %21 : vector<16x1xf32>
      %23 = arith.subf %19, %22 : vector<16x1xf32>
      %24 = math.exp %23 : vector<16x1xf32>
      %25 = vector.broadcast %22 : vector<16x1xf32> to vector<16x16xf32>
      %26 = arith.subf %9, %25 : vector<16x16xf32>
      %27 = math.exp %26 : vector<16x16xf32>
      %c0_10 = arith.constant 0 : index
      %c0_11 = arith.constant 0 : index
      %28 = vector.load %arg10[%c0_10, %c0_11] : memref<16x1xf32, #tpu.memory_space<vmem>>, vector<16x1xf32>
      %29 = arith.mulf %24, %28 : vector<16x1xf32>
      %cst_12 = arith.constant dense<0.000000e+00> : vector<16xf32>
      %30 = vector.multi_reduction <add>, %27, %cst_12 [1] : vector<16x16xf32> to vector<16xf32>
      %31 = vector.shape_cast %30 : vector<16xf32> to vector<16x1xf32>
      %32 = arith.addf %29, %31 : vector<16x1xf32>
      %c0_13 = arith.constant 0 : index
      %c0_14 = arith.constant 0 : index
      %33 = vector.load %arg10[%c0_13, %c0_14] : memref<16x1xf32, #tpu.memory_space<vmem>>, vector<16x1xf32>
      tpu.vector_store %arg10[%c0_13, %c0_14], %32 {strides = array<i32>} : memref<16x1xf32, #tpu.memory_space<vmem>>, vector<16x1xf32>,
      %c0_15 = arith.constant 0 : index
      %c0_16 = arith.constant 0 : index
      %34 = vector.load %arg11[%c0_15, %c0_16] : memref<16x128xf32, #tpu.memory_space<vmem>>, vector<16x128xf32>
      %35 = vector.broadcast %24 : vector<16x1xf32> to vector<16x128xf32>
      %36 = arith.mulf %35, %34 : vector<16x128xf32>
      %37 = arith.truncf %27 : vector<16x16xf32> to vector<16x16xbf16>
      %c0_17 = arith.constant 0 : index
      %c0_18 = arith.constant 0 : index
      %38 = vector.load %arg6[%c0_17, %c0_18] : memref<16x128xbf16, #tpu.memory_space<vmem>>, vector<16x128xbf16>
      %cst_19 = arith.constant dense<0.000000e+00> : vector<16x128xf32>
      %39 = tpu.matmul %37, %38, %cst_19 {dimension_numbers = #tpu.dot_dimension_numbers<[1], [0], [0], [1], [0, 0, 1, 1], [], []>} : vector<16x16xbf16>, vector<16x128xbf16>, vector<16x128xf32> -> vector<16x128xf32>
      %40 = arith.addf %36, %39 : vector<16x128xf32>
      %c0_20 = arith.constant 0 : index
      %c0_21 = arith.constant 0 : index
      %41 = vector.load %arg11[%c0_20, %c0_21] : memref<16x128xf32, #tpu.memory_space<vmem>>, vector<16x128xf32>
      tpu.vector_store %arg11[%c0_20, %c0_21], %40 {strides = array<i32>} : memref<16x128xf32, #tpu.memory_space<vmem>>, vector<16x128xf32>,
      %c0_22 = arith.constant 0 : index
      %c0_23 = arith.constant 0 : index
      %42 = vector.load %arg9[%c0_22, %c0_23] : memref<16x1xf32, #tpu.memory_space<vmem>>, vector<16x1xf32>
      tpu.vector_store %arg9[%c0_22, %c0_23], %22 {strides = array<i32>} : memref<16x1xf32, #tpu.memory_space<vmem>>, vector<16x1xf32>,
    } else {
    }
    %13 = arith.cmpi eq, %3, %1 : i32
    %14 = arith.extui %13 : i1 to i32
    %c0_i32_5 = arith.constant 0 : i32
    %15 = arith.cmpi ne, %14, %c0_i32_5 : i32
    scf.if %15 {
      %c0_7 = arith.constant 0 : index
      %c0_8 = arith.constant 0 : index
      %19 = vector.load %arg7[%c0_7, %c0_8] : memref<16x16xf32, #tpu.memory_space<vmem>>, vector<16x16xf32>
      %20 = arith.addf %9, %19 : vector<16x16xf32>
      %c0_9 = arith.constant 0 : index
      %c0_10 = arith.constant 0 : index
      %21 = vector.load %arg9[%c0_9, %c0_10] : memref<16x1xf32, #tpu.memory_space<vmem>>, vector<16x1xf32>
      %cst_11 = arith.constant dense<0xFF800000> : vector<16xf32>
      %22 = vector.multi_reduction <maximumf>, %20, %cst_11 [1] : vector<16x16xf32> to vector<16xf32>
      %23 = vector.shape_cast %22 : vector<16xf32> to vector<16x1xf32>
      %24 = arith.maximumf %21, %23 : vector<16x1xf32>
      %25 = arith.subf %21, %24 : vector<16x1xf32>
      %26 = math.exp %25 : vector<16x1xf32>
      %27 = vector.broadcast %24 : vector<16x1xf32> to vector<16x16xf32>
      %28 = arith.subf %20, %27 : vector<16x16xf32>
      %29 = math.exp %28 : vector<16x16xf32>
      %c0_12 = arith.constant 0 : index
      %c0_13 = arith.constant 0 : index
      %30 = vector.load %arg10[%c0_12, %c0_13] : memref<16x1xf32, #tpu.memory_space<vmem>>, vector<16x1xf32>
      %31 = arith.mulf %26, %30 : vector<16x1xf32>
      %cst_14 = arith.constant dense<0.000000e+00> : vector<16xf32>
      %32 = vector.multi_reduction <add>, %29, %cst_14 [1] : vector<16x16xf32> to vector<16xf32>
      %33 = vector.shape_cast %32 : vector<16xf32> to vector<16x1xf32>
      %34 = arith.addf %31, %33 : vector<16x1xf32>
      %c0_15 = arith.constant 0 : index
      %c0_16 = arith.constant 0 : index
      %35 = vector.load %arg10[%c0_15, %c0_16] : memref<16x1xf32, #tpu.memory_space<vmem>>, vector<16x1xf32>
      tpu.vector_store %arg10[%c0_15, %c0_16], %34 {strides = array<i32>} : memref<16x1xf32, #tpu.memory_space<vmem>>, vector<16x1xf32>,
      %c0_17 = arith.constant 0 : index
      %c0_18 = arith.constant 0 : index
      %36 = vector.load %arg11[%c0_17, %c0_18] : memref<16x128xf32, #tpu.memory_space<vmem>>, vector<16x128xf32>
      %37 = vector.broadcast %26 : vector<16x1xf32> to vector<16x128xf32>
      %38 = arith.mulf %37, %36 : vector<16x128xf32>
      %39 = arith.truncf %29 : vector<16x16xf32> to vector<16x16xbf16>
      %c0_19 = arith.constant 0 : index
      %c0_20 = arith.constant 0 : index
      %40 = vector.load %arg6[%c0_19, %c0_20] : memref<16x128xbf16, #tpu.memory_space<vmem>>, vector<16x128xbf16>
      %cst_21 = arith.constant dense<0.000000e+00> : vector<16x128xf32>
      %41 = tpu.matmul %39, %40, %cst_21 {dimension_numbers = #tpu.dot_dimension_numbers<[1], [0], [0], [1], [0, 0, 1, 1], [], []>} : vector<16x16xbf16>, vector<16x128xbf16>, vector<16x128xf32> -> vector<16x128xf32>
      %42 = arith.addf %38, %41 : vector<16x128xf32>
      %c0_22 = arith.constant 0 : index
      %c0_23 = arith.constant 0 : index
      %43 = vector.load %arg11[%c0_22, %c0_23] : memref<16x128xf32, #tpu.memory_space<vmem>>, vector<16x128xf32>
      tpu.vector_store %arg11[%c0_22, %c0_23], %42 {strides = array<i32>} : memref<16x128xf32, #tpu.memory_space<vmem>>, vector<16x128xf32>,
      %c0_24 = arith.constant 0 : index
      %c0_25 = arith.constant 0 : index
      %44 = vector.load %arg9[%c0_24, %c0_25] : memref<16x1xf32, #tpu.memory_space<vmem>>, vector<16x1xf32>
      tpu.vector_store %arg9[%c0_24, %c0_25], %24 {strides = array<i32>} : memref<16x1xf32, #tpu.memory_space<vmem>>, vector<16x1xf32>,
    } else {
    }
    %16 = arith.cmpi eq, %3, %1 : i32
    %17 = arith.extui %16 : i1 to i32
    %c0_i32_6 = arith.constant 0 : i32
    %18 = arith.cmpi ne, %17, %c0_i32_6 : i32
    scf.if %18 {
      %c0_7 = arith.constant 0 : index
      %c0_8 = arith.constant 0 : index
      %19 = vector.load %arg11[%c0_7, %c0_8] : memref<16x128xf32, #tpu.memory_space<vmem>>, vector<16x128xf32>
      %c0_9 = arith.constant 0 : index
      %c0_10 = arith.constant 0 : index
      %20 = vector.load %arg10[%c0_9, %c0_10] : memref<16x1xf32, #tpu.memory_space<vmem>>, vector<16x1xf32>
      %21 = vector.broadcast %20 : vector<16x1xf32> to vector<16x128xf32>
      %22 = arith.divf %19, %21 : vector<16x128xf32>
      %c0_11 = arith.constant 0 : index
      %c0_12 = arith.constant 0 : index
      %23 = vector.load %arg8[%c0_11, %c0_12] : memref<16x128xf32, #tpu.memory_space<vmem>>, vector<16x128xf32>
      tpu.vector_store %arg8[%c0_11, %c0_12], %22 {strides = array<i32>} : memref<16x128xf32, #tpu.memory_space<vmem>>, vector<16x128xf32>,
    } else {
    }
    return
  }
  func.func @transform_0(%arg0: i32, %arg1: i32, %arg2: memref<1xi32, #tpu.memory_space<smem>>, %arg3: memref<1xi32, #tpu.memory_space<smem>>) -> (i32, i32) {
    %c1_i32 = arith.constant 1 : i32
    %0 = arith.muli %arg0, %c1_i32 : i32
    %1 = arith.index_cast %arg1 : i32 to index
    %2 = memref.load %arg2[%1] : memref<1xi32, #tpu.memory_space<smem>>
    %3 = arith.addi %0, %2 : i32
    %c0_i32 = arith.constant 0 : i32
    %c0_i32_0 = arith.constant 0 : i32
    return %3, %c0_i32 : i32, i32
  }
  func.func @transform_1(%arg0: i32, %arg1: i32, %arg2: memref<1xi32, #tpu.memory_space<smem>>, %arg3: memref<1xi32, #tpu.memory_space<smem>>) -> (i32, i32) {
    %c1_i32 = arith.constant 1 : i32
    %0 = arith.muli %arg0, %c1_i32 : i32
    %1 = arith.index_cast %arg1 : i32 to index
    %2 = memref.load %arg3[%1] : memref<1xi32, #tpu.memory_space<smem>>
    %3 = arith.addi %0, %2 : i32
    %c0_i32 = arith.constant 0 : i32
    %c0_i32_0 = arith.constant 0 : i32
    return %3, %c0_i32 : i32, i32
  }
  func.func @transform_2(%arg0: i32, %arg1: i32, %arg2: memref<1xi32, #tpu.memory_space<smem>>, %arg3: memref<1xi32, #tpu.memory_space<smem>>) -> (i32, i32) {
    %c1_i32 = arith.constant 1 : i32
    %0 = arith.muli %arg0, %c1_i32 : i32
    %1 = arith.index_cast %arg1 : i32 to index
    %2 = memref.load %arg3[%1] : memref<1xi32, #tpu.memory_space<smem>>
    %3 = arith.addi %0, %2 : i32
    %c0_i32 = arith.constant 0 : i32
    %c0_i32_0 = arith.constant 0 : i32
    return %3, %c0_i32 : i32, i32
  }
  func.func @transform_3(%arg0: i32, %arg1: i32, %arg2: memref<1xi32, #tpu.memory_space<smem>>, %arg3: memref<1xi32, #tpu.memory_space<smem>>) -> (i32, i32) {
    %c0_i32 = arith.constant 0 : i32
    %c0_i32_0 = arith.constant 0 : i32
    %c0_i32_1 = arith.constant 0 : i32
    return %c0_i32, %c0_i32_0 : i32, i32
  }
  func.func @transform_4(%arg0: i32, %arg1: i32, %arg2: memref<1xi32, #tpu.memory_space<smem>>, %arg3: memref<1xi32, #tpu.memory_space<smem>>) -> (i32, i32) {
    %c1_i32 = arith.constant 1 : i32
    %0 = arith.muli %arg0, %c1_i32 : i32
    %1 = arith.index_cast %arg1 : i32 to index
    %2 = memref.load %arg2[%1] : memref<1xi32, #tpu.memory_space<smem>>
    %3 = arith.addi %0, %2 : i32
    %c0_i32 = arith.constant 0 : i32
    %c0_i32_0 = arith.constant 0 : i32
    return %3, %c0_i32 : i32, i32
  }
}

</mosaic_0001>

<bundles_post_ra>
// kernel: attention_head.3
= control target key start
LH: loop header
LB: loop body
LE: loop exit
PB: predicated region body
PF: predicated region fallthrough
CT: control target
= control target key end

     0   :  { %s861_s25 = smov 0   ;;  %s863_s26 = smov 0   ;;  %s953_s0 = inlined_call_operand.<no memory space> [shape: s32[1], index: 0, kind: input, shape index: {}, may-alias: {0,1}]   ;;  %s954_s1 = inlined_call_operand.<no memory space> [shape: s32[1], index: 1, kind: input, shape index: {}, may-alias: {0,1}]   ;;  %s955_s2 = inlined_call_operand.vmem [shape: bf16[32,128], index: 2, kind: input, shape index: {}]   ;;  %s956_s3 = inlined_call_operand.vmem [shape: bf16[32,128], index: 3, kind: input, shape index: {}]   ;;  %s957_s4 = inlined_call_operand.vmem [shape: bf16[32,128], index: 4, kind: input, shape index: {}]   ;;  %s958_s5 = inlined_call_operand.vmem [shape: f32[16,16], index: 5, kind: input, shape index: {}]   ;;  %s959_s6 = inlined_call_operand.vmem [shape: f32[32,128], index: 6, kind: output, shape index: {}]  }
   0x1   :  { %11 = sst [smem:[#allocation6]] %s953_s0  ;;  %s865_s27 = smov 0  }
   0x2   :  { %12 = sst [smem:[#allocation7]] %s954_s1 }
   0x3 LB: > { %s30_s0 = sadd.s32 1, %s810_s26  ;;  %p702_p0 = scmp.ge.s32.totalorder %s814_s27, 1  ;;  %s814_s27 = sphi %s865_s27, %s18_s27   ;;  %s810_s26 = sphi %s863_s26, %s961_s26   ;;  %s806_s25 = sphi %s861_s25, %s960_s25  }
   0x4   : > { %p32_p1 = scmp.ge.s32.totalorder %s30_s0, 2  ;;  %p229_p2 = scmp.lt.s32.totalorder %s814_s27, 3 }
   0x6   : > { %s963_s0 = smov (%p32_p1, %s30_s0), 0  ;;  %p230_p3 = pnand %p702_p0, %p229_p2 }
   0x7   : > { %s879_s1 = sld [smem:[#allocation6]] (!%p230_p3) }
   0x8   : > { %233 = sbr.rel (%p230_p3) target bundleno = 1094 (0x446), region = 36  ;;  %s881_s28 = sld [smem:[#allocation7]] (!%p230_p3) }
   0xd   : > { %s274_s29 = sadd.s32 %s806_s25, %s879_s1 }
   0xe   : > { %s703_s30 = sshll.u32 %s274_s29, 1  ;;  %s284_s7 = sadd.s32 %s806_s25, %s881_s28 }
   0xf   : > { %p276_p4 = scmp.lt.s32.totalorder %s703_s30, 3  ;;  %s705_s8 = sshll.u32 %s284_s7, 1 }
  0x10   : > { %p286_p5 = scmp.lt.s32.totalorder %s705_s8, 3  ;;  %p711_p6 = scmp.ne.s32.totalorder %s881_s28, 0 }
  0x11   : > { %s965_s30 = smov (!%p276_p4, %s703_s30), 3 }
  0x12   : > { %s967_s8 = smov (!%p286_p5, %s705_s8), 3  ;;  %s704_s9 = sshll.u32 %s965_s30, 2 }
  0x13   : > { %s710_s10 = sshll.u32 %s965_s30, 3  ;;  %s279_s13 = scalar_lea.vmem %s955_s2, %s704_s9 }
  0x14   : > { %s706_s14 = sshll.u32 %s967_s8, 2  ;;  %s899_s23 = scalar_lea.vmem %s959_s6, %s710_s10 }
  0x15   : > { %s289_s17 = scalar_lea.vmem %s956_s3, %s706_s14  ;;  %s894_s20 = scalar_lea.vmem %s957_s4, %s706_s14 }
  0x16   : > { %319 = sbr.rel (%p711_p6) target bundleno = 34 (0x22), region = 40 }
  0x1b   : > { %vm320_vm0 = vcmask 7168   ;;  %v816_v0 = vmov -1e+30   ;;  %v817_v1 = vmov 0.0  }
  0x1c   : > { %321 = vst.msk [vmem:[#allocation2] sm:$0xff] %vm320_vm0, %v816_v0 }
  0x1d   : > { %322 = vst.msk [vmem:[#allocation2 + $0x8] sm:$0xff] %vm320_vm0, %v816_v0 }
  0x1e   : > { %323 = vst.msk [vmem:[#allocation3] sm:$0xff] %vm320_vm0, %v817_v1 }
  0x1f   : > { %324 = vst.msk [vmem:[#allocation3 + $0x8] sm:$0xff] %vm320_vm0, %v817_v1 }
  0x20   : > { %325 = vst [vmem:[#allocation4] sm:$0xff] %v817_v1 }
  0x21   : > { %326 = vst [vmem:[#allocation4 + $0x8] sm:$0xff] %v817_v1 }
  0x22 PF: > { %v735_v2 = vld [vmem:[%s289_s17] sm:$0xff]  ;;  %p720_p7 = scmp.ge.s32.totalorder %s881_s28, %s879_s1 }
  0x23   : > { %350 = vmatpush.bf16.xpose.msra.mxu0 %v735_v2  ;;  %v734_v3 = vld [vmem:[%s279_s13] sm:$0xff] }
  0x2a   : > { %351 = vmatmul.bf16.vlgmr.msra.gmra.mxu0 %v734_v3 }
  0xa7   : > { %v902_v4 = vpop.f32.mrf.mxu0 }
  0xab   : > { %360 = sbr.rel (%p720_p7) target bundleno = 569 (0x239), region = 44 }
  0xaf   : > { %v904_v5 = vpop.f32.mrf.mxu0 }
  0xb0   : > { %vm363_vm1 = vcmask 130048   ;;  %v818_v8 = vmov 0   ;;  %v361_v9 = vld [vmem:[#allocation2] sm:$0xff]  ;;  %vm406_vm2 = vcmask 7168   ;;  %v362_v14 = vld [vmem:[#allocation2 + $0x8] sm:$0xff]  ;;  %v394_v33 = vld [vmem:[#allocation3] sm:$0xff] }
  0xb1   : > { %v364_v6 = vsel %vm363_vm1, %v902_v4, -inf  ;;  %v367_v7 = vsel %vm363_vm1, %v904_v5, -inf  ;;  %766 = vset.pattern.permute.xlu1 %v818_v8  ;;  %767 = vset.pattern.permute.xlu2 %v818_v8  ;;  %v736_v21 = vld [vmem:[%s894_s20] sm:$0xff]  ;;  %v395_v37 = vld [vmem:[#allocation3 + $0x8] sm:$0xff]  ;;  %v410_v46 = vld [vmem:[#allocation4 + $0x8] sm:$0xff] }
  0xb2   : > { %365 = vmax.xlane.f32.xlu0 %v364_v6  ;;  %442 = vmatpush.bf16.msra.mxu0 %v736_v21  ;;  %v409_v42 = vld [vmem:[#allocation4] sm:$0xff] }
  0xb3   : > { %768 = vset.pattern.permute.xlu0 %v818_v8 }
  0xba   : > { %368 = vmax.xlane.f32.xlu0 %v367_v7 }
 0x125   : > { %v366_v10 = vpop.xlane.xlu0 %365 }
 0x126   : > { %v370_v11 = vmax.f32 %v361_v9, %v366_v10 }
 0x128   : > { %v372_v12 = vsub.f32 %v361_v9, %v370_v11  ;;  %453 = vst.msk [vmem:[#allocation2] sm:$0xff] %vm406_vm2, %v370_v11  ;;  %380 = vperm.xlu1 %766, %v370_v11  }
 0x12a   : > { %v374_v13 = vmul.f32 1.442695, %v372_v12 }
 0x12c   : > { %769 = vpow2.f32 %v374_v13 }
 0x12d   : > { %v369_v15 = vpop.xlane.xlu0 %368 }
 0x12e   : > { %v371_v16 = vmax.f32 %v362_v14, %v369_v15 }
 0x130   : > { %v373_v17 = vsub.f32 %v362_v14, %v371_v16  ;;  %454 = vst.msk [vmem:[#allocation2 + $0x8] sm:$0xff] %vm406_vm2, %v371_v16  ;;  %385 = vperm.xlu1 %766, %v371_v16  }
 0x132   : > { %v770_v18 = vpop.eup %769  ;;  %v376_v19 = vmul.f32 1.442695, %v373_v17 }
 0x133   : > { %413 = vperm.xlu2 %767, %v770_v18   ;;  %v396_v34 = vmul.f32 %v770_v18, %v394_v33 }
 0x134   : > { %771 = vpow2.f32 %v376_v19 }
 0x13a   : > { %v772_v20 = vpop.eup %771 }
 0x13b   : > { %418 = vperm.xlu2 %767, %v772_v20   ;;  %v397_v38 = vmul.f32 %v772_v20, %v395_v37 }
 0x18d   : > { %v414_v41 = vpop.permute.xlu2 %413 }
 0x18e   : > { %v421_v43 = vmul.f32 %v414_v41, %v409_v42 }
 0x195   : > { %v419_v47 = vpop.permute.xlu2 %418 }
 0x196   : > { %v422_v48 = vmul.f32 %v419_v47, %v410_v46 }
 0x19a   : > { %v381_v22 = vpop.permute.xlu1 %380 }
 0x19b   : > { %v388_v23 = vsub.f32 %v902_v4, %v381_v22 }
 0x19d   : > { %v390_v24 = vmul.f32 1.442695, %v388_v23 }
 0x19f   : > { %773 = vpow2.f32 %v390_v24 }
 0x1a2   : > { %v386_v25 = vpop.permute.xlu1 %385 }
 0x1a3   : > { %v389_v26 = vsub.f32 %v904_v5, %v386_v25 }
 0x1a5   : > { %v774_v27 = vpop.eup %773  ;;  %v392_v28 = vmul.f32 1.442695, %v389_v26 }
 0x1a6   : > { %v398_v29 = vsel %vm363_vm1, %v774_v27, 0.0 }
 0x1a7   : > { %775 = vpow2.f32 %v392_v28  ;;  %399 = vadd.xlane.f32.xlu0 %v398_v29 }
 0x1ad   : > { %v776_v30 = vpop.eup %775 }
 0x1ae   : > { %v401_v31 = vsel %vm363_vm1, %v776_v30, 0.0  ;;  %v423_v32 = vpack.c.bf16 %v776_v30, %v774_v27 }
 0x1af   : > { %402 = vadd.xlane.f32.xlu1 %v401_v31 }
 0x1b0   : > { %725 = vmatmul.msk.bf16.vlgmr.msra.gmra.mxu0 %vm363_vm1, %v423_v32 }
 0x21a   : > { %v400_v35 = vpop.xlane.xlu0 %399 }
 0x21b   : > { %v404_v36 = vadd.f32 %v400_v35, %v396_v34 }
 0x21d   : > { %407 = vst.msk [vmem:[#allocation3] sm:$0xff] %vm406_vm2, %v404_v36 }
 0x222   : > { %v403_v39 = vpop.xlane.xlu1 %402 }
 0x223   : > { %v405_v40 = vadd.f32 %v403_v39, %v397_v38 }
 0x225   : > { %408 = vst.msk [vmem:[#allocation3 + $0x8] sm:$0xff] %vm406_vm2, %v405_v40 }
 0x22d   : > { %v444_v44 = vpop.f32.mrf.mxu0 }
 0x22e   : > { %v449_v45 = vadd.f32 %v444_v44, %v421_v43 }
 0x230   : > { %451 = vst [vmem:[#allocation4] sm:$0xff] %v449_v45 }
 0x235   : > { %v446_v49 = vpop.f32.mrf.mxu0 }
 0x236   : > { %v450_v50 = vadd.f32 %v446_v49, %v422_v48 }
 0x238   : > { %452 = vst [vmem:[#allocation4 + $0x8] sm:$0xff] %v450_v50 }
 0x239 PF: > { %p726_p8 = scmp.ne.s32.totalorder %s881_s28, %s879_s1 }
 0x23b   : > { %458 = sbr.rel (%p726_p8) target bundleno = 1094 (0x446), region = 48 }
 0x240   : > { %v459_v51 = vld [vmem:[%s958_s5] sm:$0xff]  ;;  %vm465_vm3 = vcmask 130048   ;;  %v460_v53 = vld [vmem:[%s958_s5 + $0x8] sm:$0xff]  ;;  %v819_v57 = vmov 0   ;;  %vm508_vm4 = vcmask 7168   ;;  %v496_v17 = vld [vmem:[#allocation3] sm:$0xff] }
 0x241   : > { %v461_v52 = vadd.f32 %v459_v51, %v902_v4  ;;  %v462_v55 = vadd.f32 %v460_v53, %v904_v5  ;;  %777 = vset.pattern.permute.xlu1 %v819_v57  ;;  %779 = vset.pattern.permute.xlu2 %v819_v57  ;;  %v463_v58 = vld [vmem:[#allocation2] sm:$0xff]  ;;  %v464_v62 = vld [vmem:[#allocation2 + $0x8] sm:$0xff]  ;;  %v497_v22 = vld [vmem:[#allocation3 + $0x8] sm:$0xff] }
 0x242   : > { %778 = vset.pattern.permute.xlu0 %v819_v57  ;;  %v737_v2 = vld [vmem:[%s894_s20] sm:$0xff]  ;;  %v512_v42 = vld [vmem:[#allocation4 + $0x8] sm:$0xff] }
 0x243   : > { %v466_v54 = vsel %vm465_vm3, %v461_v52, -inf  ;;  %v469_v56 = vsel %vm465_vm3, %v462_v55, -inf  ;;  %544 = vmatpush.bf16.msra.mxu0 %v737_v2  ;;  %v511_v27 = vld [vmem:[#allocation4] sm:$0xff] }
 0x244   : > { %467 = vmax.xlane.f32.xlu0 %v466_v54 }
 0x24c   : > { %470 = vmax.xlane.f32.xlu0 %v469_v56 }
 0x2b7   : > { %v468_v59 = vpop.xlane.xlu0 %467 }
 0x2b8   : > { %v472_v60 = vmax.f32 %v463_v58, %v468_v59 }
 0x2ba   : > { %v474_v61 = vsub.f32 %v463_v58, %v472_v60  ;;  %555 = vst.msk [vmem:[#allocation2] sm:$0xff] %vm508_vm4, %v472_v60  ;;  %482 = vperm.xlu1 %777, %v472_v60  }
 0x2bc   : > { %v476_v14 = vmul.f32 1.442695, %v474_v61 }
 0x2bf   : > { %v471_v63 = vpop.xlane.xlu0 %470 }
 0x2c0   : > { %v473_v0 = vmax.f32 %v464_v62, %v471_v63 }
 0x2c2   : > { %v475_v1 = vsub.f32 %v464_v62, %v473_v0  ;;  %556 = vst.msk [vmem:[#allocation2 + $0x8] sm:$0xff] %vm508_vm4, %v473_v0  ;;  %487 = vperm.xlu1 %777, %v473_v0  }
 0x2c4   : > { %v478_v16 = vmul.f32 1.442695, %v475_v1 }
 0x32c   : > { %v483_v3 = vpop.permute.xlu1 %482 }
 0x32d   : > { %v490_v4 = vsub.f32 %v461_v52, %v483_v3 }
 0x32f   : > { %v492_v5 = vmul.f32 1.442695, %v490_v4 }
 0x331   : > { %780 = vpow2.f32 %v492_v5 }
 0x334   : > { %v488_v6 = vpop.permute.xlu1 %487 }
 0x335   : > { %v491_v7 = vsub.f32 %v462_v55, %v488_v6 }
 0x337   : > { %v781_v8 = vpop.eup %780  ;;  %v494_v9 = vmul.f32 1.442695, %v491_v7 }
 0x338   : > { %v500_v10 = vsel %vm465_vm3, %v781_v8, 0.0 }
 0x339   : > { %782 = vpow2.f32 %v494_v9  ;;  %501 = vadd.xlane.f32.xlu2 %v500_v10 }
 0x33a   : > { %784 = vpow2.f32 %v476_v14 }
 0x33b   : > { %786 = vpow2.f32 %v478_v16 }
 0x33f   : > { %v783_v11 = vpop.eup %782 }
 0x340   : > { %v503_v12 = vsel %vm465_vm3, %v783_v11, 0.0  ;;  %v525_v13 = vpack.c.bf16 %v783_v11, %v781_v8  ;;  %v785_v15 = vpop.eup %784 }
 0x341   : > { %504 = vadd.xlane.f32.xlu2 %v503_v12  ;;  %v498_v18 = vmul.f32 %v785_v15, %v496_v17  ;;  %v787_v21 = vpop.eup %786 }
 0x342   : > { %731 = vmatmul.msk.bf16.vlgmr.msra.gmra.mxu0 %vm465_vm3, %v525_v13  ;;  %v499_v23 = vmul.f32 %v787_v21, %v497_v22 }
 0x359   : > { %515 = vperm.xlu2 %779, %v785_v15  }
 0x3ac   : > { %v502_v19 = vpop.xlane.xlu2 %501 }
 0x3ad   : > { %v506_v20 = vadd.f32 %v502_v19, %v498_v18 }
 0x3af   : > { %509 = vst.msk [vmem:[#allocation3] sm:$0xff] %vm508_vm4, %v506_v20 }
 0x3b4   : > { %v505_v24 = vpop.xlane.xlu2 %504 }
 0x3b5   : > { %v507_v25 = vadd.f32 %v505_v24, %v499_v23 }
 0x3b6   : > { %v559_v26 = vld [vmem:[#allocation3] sm:$0xff] }
 0x3b7   : > { %510 = vst.msk [vmem:[#allocation3 + $0x8] sm:$0xff] %vm508_vm4, %v507_v25  ;;  %563 = vperm.xlu0 %778, %v559_v26  }
 0x3bc   : > { %v516_v28 = vpop.permute.xlu2 %515 }
 0x3bd   : > { %v523_v29 = vmul.f32 %v516_v28, %v511_v27 }
 0x3be   : > { %v560_v30 = vld [vmem:[#allocation3 + $0x8] sm:$0xff] }
 0x3bf   : > { %v546_v31 = vpop.f32.mrf.mxu0  ;;  %568 = vperm.xlu1 %777, %v560_v30  }
 0x3c0   : > { %v551_v32 = vadd.f32 %v546_v31, %v523_v29 }
 0x3c2   : > { %553 = vst [vmem:[#allocation4] sm:$0xff] %v551_v32 }
 0x3c7   : > { %520 = vperm.xlu1 %777, %v787_v21   ;;  %v548_v50 = vpop.f32.mrf.mxu0 }
 0x429   : > { %v564_v33 = vpop.permute.xlu0 %563 }
 0x42a   : > { %788 = vrcp.f32 %v564_v33  ;;  %v582_v38 = vand.u32 2147483648, %v564_v33  ;;  %v580_v40 = vand.u32 2147483647, %v564_v33  ;;  %vm576_vm6 = vweird.f32 %v564_v33 }
 0x42c   : > { %v583_v44 = vor.u32 1.1754944e-38, %v582_v38  ;;  %vm581_vm8 = vcmp.eq.f32.partialorder %v580_v40, 8.507059e+37 }
 0x430   : > { %v789_v34 = vpop.eup %788 }
 0x431   : > { %v572_v35 = vmul.f32 %v789_v34, %v564_v33  ;;  %v569_v36 = vpop.permute.xlu1 %568  ;;  %vm577_vm5 = vweird.f32 %v789_v34 }
 0x432   : > { %790 = vrcp.f32 %v569_v36  ;;  %vm578_vm7 = vmor %vm576_vm6, %vm577_vm5  ;;  %v597_v53 = vand.u32 2147483648, %v569_v36  ;;  %v595_v56 = vand.u32 2147483647, %v569_v36  ;;  %vm591_vm10 = vweird.f32 %v569_v36 }
 0x433   : > { %v573_v37 = vsub.f32 1.0, %v572_v35 }
 0x434   : > { %v598_v58 = vor.u32 1.1754944e-38, %v597_v53  ;;  %vm596_vm12 = vcmp.eq.f32.partialorder %v595_v56, 8.507059e+37 }
 0x435   : > { %v574_v39 = vmul.f32 %v789_v34, %v573_v37 }
 0x437   : > { %v575_v41 = vadd.f32 %v789_v34, %v574_v39 }
 0x438   : > { %v791_v43 = vpop.eup %790 }
 0x439   : > { %v579_v45 = vsel %vm578_vm7, %v789_v34, %v575_v41  ;;  %v587_v46 = vmul.f32 %v791_v43, %v569_v36  ;;  %v521_v47 = vpop.permute.xlu1 %520  ;;  %vm592_vm9 = vweird.f32 %v791_v43 }
 0x43a   : > { %v584_v48 = vsel %vm581_vm8, %v583_v44, %v579_v45  ;;  %v524_v49 = vmul.f32 %v521_v47, %v512_v42  ;;  %vm593_vm11 = vmor %vm591_vm10, %vm592_vm9 }
 0x43b   : > { %v585_v51 = vmul.f32 %v584_v48, %v551_v32  ;;  %v588_v52 = vsub.f32 1.0, %v587_v46 }
 0x43c   : > { %v552_v54 = vadd.f32 %v548_v50, %v524_v49 }
 0x43d   : > { %601 = vst [vmem:[%s899_s23] sm:$0xff] %v585_v51  ;;  %v589_v55 = vmul.f32 %v791_v43, %v588_v52 }
 0x43e   : > { %554 = vst [vmem:[#allocation4 + $0x8] sm:$0xff] %v552_v54 }
 0x43f   : > { %v590_v57 = vadd.f32 %v791_v43, %v589_v55 }
 0x441   : > { %v594_v59 = vsel %vm593_vm11, %v791_v43, %v590_v57 }
 0x442   : > { %v599_v60 = vsel %vm596_vm12, %v598_v58, %v594_v59 }
 0x443   : > { %v600_v61 = vmul.f32 %v599_v60, %v552_v54 }
 0x445   : > { %602 = vst [vmem:[%s899_s23 + $0x8] sm:$0xff] %v600_v61 }
 0x446 PF: > { %s18_s27 = sadd.s32 1, %s814_s27   ;;  %s960_s25 = smov %s810_s26 }
 0x447   : > { %p15_p9 = scmp.ge.s32.totalorder %s18_s27, 4   ;;  %s961_s26 = smov %s963_s0 }
 0x449   :  { %17 = sbr.rel (!%p15_p9) target bundleno = 3 (0x3), region = 84 }

// kernel: attention_head.2
= control target key start
LH: loop header
LB: loop body
LE: loop exit
PB: predicated region body
PF: predicated region fallthrough
CT: control target
= control target key end

     0   :  { %vm61_vm0 = vcmask 261120   ;;  %s323_s1 = inlined_call_operand.vmem [shape: bf16[32,384], index: 1, kind: input, shape index: {}]   ;;  %s324_s0 = inlined_call_operand.vmem [shape: f32[32,32], index: 0, kind: input, shape index: {}]   ;;  %s325_s3 = inlined_call_operand.vmem [shape: bf16[32,128], index: 3, kind: output, shape index: {1}]   ;;  %s326_s2 = inlined_call_operand.vmem [shape: bf16[32,128], index: 2, kind: output, shape index: {0}]   ;;  %s327_s4 = inlined_call_operand.vmem [shape: bf16[32,128], index: 4, kind: output, shape index: {2}]  }
   0x1   :  { %v194_v0 = vld [vmem:[%s323_s1 + $0x1c] sm:$0xf]  ;;  %v177_v1 = vld [vmem:[%s323_s1 + $0x24] sm:$0xf0]  ;;  %v183_v2 = vld [vmem:[%s323_s1 + $0x20] sm:$0xf] }
   0x2   :  { %v180_v3 = vor.u32 %v194_v0, %v177_v1  ;;  %v196_v4 = vld [vmem:[%s323_s1 + $0x28] sm:$0xf0]  ;;  %v191_v5 = vld [vmem:[%s323_s1 + $0x4] sm:$0xf]  ;;  %v165_v6 = vld [vmem:[%s323_s1 + $0xc] sm:$0xf0] }
   0x3   :  { %v184_v7 = vor.u32 %v196_v4, %v183_v2  ;;  %v171_v8 = vld [vmem:[%s323_s1 + $0x8] sm:$0xf]  ;;  %v193_v9 = vld [vmem:[%s323_s1 + $0x10] sm:$0xf0]  ;;  %v15_v10 = vld [vmem:[%s324_s0] sm:$0xff]  ;;  %v168_v11 = vor.u32 %v191_v5, %v165_v6 }
   0x4   :  { %93 = vmatpush.bf16.msra.mxu1 %v180_v3  ;;  %v16_v12 = vld [vmem:[%s324_s0 + $0x8] sm:$0xff]  ;;  %v175_v13 = vld [vmem:[%s323_s1 + $0x18] sm:$0xf]  ;;  %v195_v14 = vld [vmem:[%s323_s1 + $0x20] sm:$0xf0]  ;;  %v172_v15 = vor.u32 %v193_v9, %v171_v8 }
   0x5   :  { %112 = vmatpush.bf16.msra.mxu2 %v184_v7  ;;  %v176_v16 = vor.u32 %v195_v14, %v175_v13  ;;  %v163_v17 = vld [vmem:[%s323_s1] sm:$0xf]  ;;  %v192_v18 = vld [vmem:[%s323_s1 + $0x8] sm:$0xf0]  ;;  %v19_v19 = vpack.c.bf16 %v16_v12, %v15_v10  ;;  %v17_v21 = vld [vmem:[%s324_s0 + $0x10] sm:$0xff] }
   0x6   :  { %v164_v20 = vor.u32 %v192_v18, %v163_v17  ;;  %v18_v22 = vld [vmem:[%s324_s0 + $0x18] sm:$0xff] }
   0x7   :  { %230 = vmatpush.bf16.msra.mxu3 %v176_v16  ;;  %74 = vmatpush.bf16.msra.mxu0 %v176_v16  ;;  %v20_v23 = vpack.c.bf16 %v18_v22, %v17_v21 }
   0x8   :  { %94 = vmatpush.bf16.msra.mxu1 %v168_v11 }
   0x9   :  { %113 = vmatpush.bf16.msra.mxu2 %v172_v15 }
   0xb   :  { %187 = vmatmul.msk.bf16.vlgmr.msra.gmra.mxu1 %vm61_vm0, %v19_v19  ;;  %231 = vmatpush.bf16.msra.mxu3 %v164_v20 }
   0xc   :  { %189 = vmatmul.msk.bf16.vlgmr.msra.gmra.mxu2 %vm61_vm0, %v19_v19  ;;  %75 = vmatpush.bf16.msra.mxu0 %v164_v20 }
   0xe   :  { %186 = vmatmul.msk.bf16.vlgmr.msra.gmra.mxu3 %vm61_vm0, %v20_v23 }
   0xf   :  { %185 = vmatmul.msk.bf16.vlgmr.msra.gmra.mxu0 %vm61_vm0, %v19_v19 }
  0x1b   :  { %188 = vmatmul.msk.bf16.gmra.mxu1 %vm61_vm0, %v20_v23 }
  0x1c   :  { %190 = vmatmul.msk.bf16.gmra.mxu2 %vm61_vm0, %v20_v23 }
  0x88   :  { %v96_v24 = vpop.f32.mrf.mxu1 }
  0x8c   :  { %v77_v25 = vpop.f32.mrf.mxu0 }
  0x8f   :  { %v115_v26 = vpop.f32.mrf.mxu2 }
  0x90   :  { %v98_v27 = vpop.f32.mrf.mxu1 }
  0x91   :  { %v210_v28 = vpack.c.bf16 %v98_v27, %v96_v24  ;;  %v82_v29 = vpop.f32.mrf.mxu3 }
  0x93   :  { %211 = vst [vmem:[%s325_s3] sm:$0xff] %v210_v28  }
  0x94   :  { %v79_v30 = vpop.f32.mrf.mxu0 }
  0x95   :  { %v200_v31 = vpack.c.bf16 %v79_v30, %v77_v25 }
  0x97   :  { %v117_v32 = vpop.f32.mrf.mxu2  ;;  %201 = vst [vmem:[%s326_s2] sm:$0xff] %v200_v31  }
  0x98   :  { %v220_v33 = vpack.c.bf16 %v117_v32, %v115_v26  ;;  %v101_v34 = vpop.f32.mrf.mxu1 }
  0x99   :  { %v84_v35 = vpop.f32.mrf.mxu3 }
  0x9a   :  { %221 = vst [vmem:[%s327_s4] sm:$0xff] %v220_v33   ;;  %v205_v36 = vpack.c.bf16 %v84_v35, %v82_v29 }
  0x9c   :  { %227 = vst [vmem:[%s326_s2 + $0x8] sm:$0xff] %v205_v36  }
  0x9f   :  { %v120_v37 = vpop.f32.mrf.mxu2 }
  0xa0   :  { %v103_v38 = vpop.f32.mrf.mxu1 }
  0xa1   :  { %v215_v39 = vpack.c.bf16 %v103_v38, %v101_v34 }
  0xa3   :  { %228 = vst [vmem:[%s325_s3 + $0x8] sm:$0xff] %v215_v39  }
  0xa7   :  { %v122_v40 = vpop.f32.mrf.mxu2 }
  0xa8   :  { %v225_v41 = vpack.c.bf16 %v122_v40, %v120_v37 }
  0xaa   :  { %229 = vst [vmem:[%s327_s4 + $0x8] sm:$0xff] %v225_v41  }

</bundles_post_ra>
